<compile_context>
chip_gen: v7x
topology: tpu7x:2x2x1
jax: 0.10.0
libtpu: 0.0.40
codegen_flags: <defaults>
</compile_context>

<pallas_src>
import jax
import jax.numpy as jnp
from jax import lax
from jax.experimental import pallas as pl
from jax.experimental.pallas import tpu as pltpu

# ---- problem sizes (small, consistent with the module's forward) ------------
B = 2            # batch
C_IN = 4         # input channels
H = W = 16       # spatial
C_OUT = 8        # conv output channels
KH = KW = 3      # conv kernel
KF = KH * KW * C_IN            # im2col feature size = 36
HP = WP = H // 2               # pooled spatial = 8
SP = HP * WP                   # pooled positions per image = 64
NP = B * SP                    # pooled positions per pool-window block = 128
FEAT = SP * C_OUT              # 512  (PyTorch flatten of (C, HP, WP))
EMB = 32
NUM_CLASSES = 10


# -----------------------------------------------------------------------------
# Fused kernel: conv (im2col GEMM) + bias + 2x2 max-pool + ReLU
#               -> embedder Linear(512, 32) -> classifier Linear(32, 10).
# No grid: a single invocation with every operand resident in VMEM.
# -----------------------------------------------------------------------------
def fused_kernel(pT_ref, wcT_ref, bc_ref, wemb_ref, bemb_ref, wcls_ref,
                 bcls_ref, out_ref):
    # (1) conv as one lane-dense GEMM: (C_OUT, KF) @ (KF, 4*NP) -> (8, 512).
    #     Columns are ordered (pool_wh, pool_ww, b, hp, wp), so each of the 4
    #     pool-window positions is a 128-lane-aligned column block.
    convT = jnp.dot(wcT_ref[...], pT_ref[...],
                    preferred_element_type=jnp.float32)          # (C_OUT, 4*NP)

    # (2) 2x2 max-pool over the 4 window blocks, then bias + ReLU.
    #     relu(max_w(conv_w) + bias) == pool(relu(conv + bias)) exactly.
    pooledT = convT[:, 0:NP]
    for w in range(1, 4):
        pooledT = jnp.maximum(pooledT, convT[:, w * NP:(w + 1) * NP])
    pooledT = jnp.maximum(pooledT + bc_ref[...], 0.0)             # (C_OUT, NP)

    # (3) embedder: emb[b, e] = sum_{c, i} pooled[b, c, i] * w_emb[c*SP + i, e]
    #     (PyTorch NCHW flatten).  Keep c as an unrolled loop index and
    #     accumulate 8 small GEMMs so the (c, i) -> 512 feature merge never
    #     becomes an in-kernel cross-lane relayout.
    acc = jnp.zeros((B, EMB), jnp.float32)
    for c in range(C_OUT):
        row = pooledT[c:c + 1, :]                                 # (1, NP)
        lhs = jnp.concatenate(
            [row[:, b * SP:(b + 1) * SP] for b in range(B)], axis=0)  # (B, SP)
        acc = acc + jnp.dot(lhs, wemb_ref[c],
                            preferred_element_type=jnp.float32)  # (B, EMB)
    emb = acc + bemb_ref[...]                                     # (B, EMB)

    # (4) classifier.
    logits = jnp.dot(emb, wcls_ref[...],
                     preferred_element_type=jnp.float32) + bcls_ref[...]
    out_ref[...] = logits                                         # (B, NUM_CLASSES)


# -----------------------------------------------------------------------------
# Wrapper: layout glue (im2col, pool-window column ordering, weight packing)
# in plain XLA; all hot-path compute inside the single Pallas kernel.
# -----------------------------------------------------------------------------
def trunk_embedder_classifier(x_nchw, params):
    w_conv, b_conv, w_emb, b_emb, w_cls, b_cls = params

    # NCHW -> NHWC, pad spatial by 1 (Conv2d padding=1).
    x = jnp.transpose(x_nchw, (0, 2, 3, 1)).astype(jnp.float32)   # (B, H, W, Cin)
    xp = jnp.pad(x, ((0, 0), (1, 1), (1, 1), (0, 0)))             # (B, H+2, W+2, Cin)

    # im2col, feature order (kh, kw, c_in) -- matches w_conv (HWIO) flatten.
    patches = jnp.concatenate(
        [xp[:, dh:dh + H, dw:dw + W, :] for dh in range(KH) for dw in range(KW)],
        axis=-1)                                                  # (B, H, W, KF)

    # Transposed GEMM rhs with columns ordered (pool_wh, pool_ww, b, hp, wp):
    # the 4 pool-window positions become 128-lane-aligned column blocks.
    p6 = patches.reshape(B, HP, 2, WP, 2, KF)                     # b,hp,wh,wp,ww,kf
    pT = jnp.transpose(p6, (5, 2, 4, 0, 1, 3)).reshape(KF, 4 * NP)  # (36, 512)

    wcT = w_conv.reshape(KF, C_OUT).T                             # (C_OUT, KF)
    bcT = b_conv.reshape(C_OUT, 1)
    # PyTorch NCHW flatten: embedder weight rows are (c, hp, wp)-ordered, so a
    # real torch weight (transposed to (in, out)) packs with a plain reshape.
    w_emb3 = w_emb.reshape(C_OUT, SP, EMB)                        # (8, 64, 32)

    return pl.pallas_call(
        fused_kernel,
        out_shape=jax.ShapeDtypeStruct((B, NUM_CLASSES), jnp.float32),
        in_specs=[pl.BlockSpec(memory_space=pltpu.MemorySpace.VMEM)] * 7,
        out_specs=pl.BlockSpec(memory_space=pltpu.MemorySpace.VMEM),
    )(pT, wcT, bcT, w_emb3, b_emb.reshape(1, EMB), w_cls,
      b_cls.reshape(1, NUM_CLASSES))


# -----------------------------------------------------------------------------
# Pure-JAX reference (same math via XLA ops) for a correctness sanity check.
# -----------------------------------------------------------------------------
def reference(x_nchw, params):
    w_conv, b_conv, w_emb, b_emb, w_cls, b_cls = params
    x = jnp.transpose(x_nchw, (0, 2, 3, 1)).astype(jnp.float32)
    y = lax.conv_general_dilated(
        x, w_conv, window_strides=(1, 1), padding=((1, 1), (1, 1)),
        dimension_numbers=("NHWC", "HWIO", "NHWC"))
    y = jax.nn.relu(y + b_conv)
    y = lax.reduce_window(y, -jnp.inf, lax.max, (1, 2, 2, 1), (1, 2, 2, 1), "VALID")
    feat = jnp.transpose(y, (0, 3, 1, 2)).reshape(B, FEAT)        # PyTorch NCHW flatten
    emb = feat @ w_emb + b_emb
    return emb @ w_cls + b_cls


def init_params(key):
    k1, k2, k3, k4, k5, k6 = jax.random.split(key, 6)
    w_conv = jax.random.normal(k1, (KH, KW, C_IN, C_OUT), jnp.float32) * 0.1
    b_conv = jax.random.normal(k2, (C_OUT,), jnp.float32) * 0.1
    w_emb = jax.random.normal(k3, (FEAT, EMB), jnp.float32) * 0.05
    b_emb = jax.random.normal(k4, (EMB,), jnp.float32) * 0.1
    w_cls = jax.random.normal(k5, (EMB, NUM_CLASSES), jnp.float32) * 0.1
    b_cls = jax.random.normal(k6, (NUM_CLASSES,), jnp.float32) * 0.1
    return (w_conv, b_conv, w_emb, b_emb, w_cls, b_cls)


if __name__ == "__main__":
    key = jax.random.PRNGKey(0)
    kx, kp = jax.random.split(key)
    x = jax.random.normal(kx, (B, C_IN, H, W), jnp.float32)   # NCHW, as in PyTorch
    params = init_params(kp)

    out = jax.jit(trunk_embedder_classifier)(x, params)
    out = jax.block_until_ready(out)

    ref = reference(x, params)
    assert out.shape == (B, NUM_CLASSES), out.shape
    assert jnp.allclose(out, ref, rtol=2e-2, atol=2e-2), (
        "mismatch: max abs err = %f" % float(jnp.max(jnp.abs(out - ref))))

    print("KERNEL_OK")
</pallas_src>

<mosaic_0001>
module attributes {stable_mosaic.version = 11 : i64} {
  func.func @fused_kernel(%arg0: memref<36x512xf32, #tpu.memory_space<vmem>>, %arg1: memref<8x36xf32, #tpu.memory_space<vmem>>, %arg2: memref<8x1xf32, #tpu.memory_space<vmem>>, %arg3: memref<8x64x32xf32, #tpu.memory_space<vmem>>, %arg4: memref<1x32xf32, #tpu.memory_space<vmem>>, %arg5: memref<32x10xf32, #tpu.memory_space<vmem>>, %arg6: memref<1x10xf32, #tpu.memory_space<vmem>>, %arg7: memref<2x10xf32, #tpu.memory_space<vmem>>) attributes {dimension_semantics = [], scalar_prefetch = 0 : i64, scratch_operands = 0 : i64, tpu.core_type = #tpu.core_type<tc>} {
    %c0 = arith.constant 0 : index
    %c0_0 = arith.constant 0 : index
    %0 = vector.load %arg1[%c0, %c0_0] : memref<8x36xf32, #tpu.memory_space<vmem>>, vector<8x36xf32>
    %c0_1 = arith.constant 0 : index
    %c0_2 = arith.constant 0 : index
    %1 = vector.load %arg0[%c0_1, %c0_2] : memref<36x512xf32, #tpu.memory_space<vmem>>, vector<36x512xf32>
    %cst = arith.constant dense<0.000000e+00> : vector<8x512xf32>
    %2 = tpu.matmul %0, %1, %cst {dimension_numbers = #tpu.dot_dimension_numbers<[1], [0], [0], [1], [0, 0, 1, 1], [], []>} : vector<8x36xf32>, vector<36x512xf32>, vector<8x512xf32> -> vector<8x512xf32>
    %3 = vector.extract_strided_slice %2 {offsets = [0, 0], sizes = [8, 128], strides = [1, 1]} : vector<8x512xf32> to vector<8x128xf32>
    %4 = vector.extract_strided_slice %2 {offsets = [0, 128], sizes = [8, 128], strides = [1, 1]} : vector<8x512xf32> to vector<8x128xf32>
    %5 = arith.maximumf %3, %4 : vector<8x128xf32>
    %6 = vector.extract_strided_slice %2 {offsets = [0, 256], sizes = [8, 128], strides = [1, 1]} : vector<8x512xf32> to vector<8x128xf32>
    %7 = arith.maximumf %5, %6 : vector<8x128xf32>
    %8 = vector.extract_strided_slice %2 {offsets = [0, 384], sizes = [8, 128], strides = [1, 1]} : vector<8x512xf32> to vector<8x128xf32>
    %9 = arith.maximumf %7, %8 : vector<8x128xf32>
    %c0_3 = arith.constant 0 : index
    %c0_4 = arith.constant 0 : index
    %10 = vector.load %arg2[%c0_3, %c0_4] : memref<8x1xf32, #tpu.memory_space<vmem>>, vector<8x1xf32>
    %11 = vector.broadcast %10 : vector<8x1xf32> to vector<8x128xf32>
    %12 = arith.addf %9, %11 : vector<8x128xf32>
    %cst_5 = arith.constant 0.000000e+00 : f32
    %13 = vector.broadcast %cst_5 : f32 to vector<8x128xf32>
    %14 = arith.maximumf %12, %13 : vector<8x128xf32>
    %cst_6 = arith.constant 0.000000e+00 : f32
    %15 = vector.broadcast %cst_6 : f32 to vector<2x32xf32>
    %16 = vector.extract_strided_slice %14 {offsets = [0, 0], sizes = [1, 128], strides = [1, 1]} : vector<8x128xf32> to vector<1x128xf32>
    %17 = vector.extract_strided_slice %16 {offsets = [0, 0], sizes = [1, 64], strides = [1, 1]} : vector<1x128xf32> to vector<1x64xf32>
    %18 = vector.extract_strided_slice %16 {offsets = [0, 64], sizes = [1, 64], strides = [1, 1]} : vector<1x128xf32> to vector<1x64xf32>
    %19 = tpu.concatenate %17, %18 in 0 : vector<1x64xf32>, vector<1x64xf32> -> vector<2x64xf32>
    %c0_7 = arith.constant 0 : index
    %c0_8 = arith.constant 0 : index
    %c0_9 = arith.constant 0 : index
    %20 = vector.load %arg3[%c0_7, %c0_8, %c0_9] : memref<8x64x32xf32, #tpu.memory_space<vmem>>, vector<1x64x32xf32>
    %21 = vector.shape_cast %20 : vector<1x64x32xf32> to vector<64x32xf32>
    %cst_10 = arith.constant dense<0.000000e+00> : vector<2x32xf32>
    %22 = tpu.matmul %19, %21, %cst_10 {dimension_numbers = #tpu.dot_dimension_numbers<[1], [0], [0], [1], [0, 0, 1, 1], [], []>} : vector<2x64xf32>, vector<64x32xf32>, vector<2x32xf32> -> vector<2x32xf32>
    %23 = arith.addf %15, %22 : vector<2x32xf32>
    %24 = vector.extract_strided_slice %14 {offsets = [1, 0], sizes = [1, 128], strides = [1, 1]} : vector<8x128xf32> to vector<1x128xf32>
    %25 = vector.extract_strided_slice %24 {offsets = [0, 0], sizes = [1, 64], strides = [1, 1]} : vector<1x128xf32> to vector<1x64xf32>
    %26 = vector.extract_strided_slice %24 {offsets = [0, 64], sizes = [1, 64], strides = [1, 1]} : vector<1x128xf32> to vector<1x64xf32>
    %27 = tpu.concatenate %25, %26 in 0 : vector<1x64xf32>, vector<1x64xf32> -> vector<2x64xf32>
    %c1 = arith.constant 1 : index
    %c0_11 = arith.constant 0 : index
    %c0_12 = arith.constant 0 : index
    %28 = vector.load %arg3[%c1, %c0_11, %c0_12] : memref<8x64x32xf32, #tpu.memory_space<vmem>>, vector<1x64x32xf32>
    %29 = vector.shape_cast %28 : vector<1x64x32xf32> to vector<64x32xf32>
    %cst_13 = arith.constant dense<0.000000e+00> : vector<2x32xf32>
    %30 = tpu.matmul %27, %29, %cst_13 {dimension_numbers = #tpu.dot_dimension_numbers<[1], [0], [0], [1], [0, 0, 1, 1], [], []>} : vector<2x64xf32>, vector<64x32xf32>, vector<2x32xf32> -> vector<2x32xf32>
    %31 = arith.addf %23, %30 : vector<2x32xf32>
    %32 = vector.extract_strided_slice %14 {offsets = [2, 0], sizes = [1, 128], strides = [1, 1]} : vector<8x128xf32> to vector<1x128xf32>
    %33 = vector.extract_strided_slice %32 {offsets = [0, 0], sizes = [1, 64], strides = [1, 1]} : vector<1x128xf32> to vector<1x64xf32>
    %34 = vector.extract_strided_slice %32 {offsets = [0, 64], sizes = [1, 64], strides = [1, 1]} : vector<1x128xf32> to vector<1x64xf32>
    %35 = tpu.concatenate %33, %34 in 0 : vector<1x64xf32>, vector<1x64xf32> -> vector<2x64xf32>
    %c2 = arith.constant 2 : index
    %c0_14 = arith.constant 0 : index
    %c0_15 = arith.constant 0 : index
    %36 = vector.load %arg3[%c2, %c0_14, %c0_15] : memref<8x64x32xf32, #tpu.memory_space<vmem>>, vector<1x64x32xf32>
    %37 = vector.shape_cast %36 : vector<1x64x32xf32> to vector<64x32xf32>
    %cst_16 = arith.constant dense<0.000000e+00> : vector<2x32xf32>
    %38 = tpu.matmul %35, %37, %cst_16 {dimension_numbers = #tpu.dot_dimension_numbers<[1], [0], [0], [1], [0, 0, 1, 1], [], []>} : vector<2x64xf32>, vector<64x32xf32>, vector<2x32xf32> -> vector<2x32xf32>
    %39 = arith.addf %31, %38 : vector<2x32xf32>
    %40 = vector.extract_strided_slice %14 {offsets = [3, 0], sizes = [1, 128], strides = [1, 1]} : vector<8x128xf32> to vector<1x128xf32>
    %41 = vector.extract_strided_slice %40 {offsets = [0, 0], sizes = [1, 64], strides = [1, 1]} : vector<1x128xf32> to vector<1x64xf32>
    %42 = vector.extract_strided_slice %40 {offsets = [0, 64], sizes = [1, 64], strides = [1, 1]} : vector<1x128xf32> to vector<1x64xf32>
    %43 = tpu.concatenate %41, %42 in 0 : vector<1x64xf32>, vector<1x64xf32> -> vector<2x64xf32>
    %c3 = arith.constant 3 : index
    %c0_17 = arith.constant 0 : index
    %c0_18 = arith.constant 0 : index
    %44 = vector.load %arg3[%c3, %c0_17, %c0_18] : memref<8x64x32xf32, #tpu.memory_space<vmem>>, vector<1x64x32xf32>
    %45 = vector.shape_cast %44 : vector<1x64x32xf32> to vector<64x32xf32>
    %cst_19 = arith.constant dense<0.000000e+00> : vector<2x32xf32>
    %46 = tpu.matmul %43, %45, %cst_19 {dimension_numbers = #tpu.dot_dimension_numbers<[1], [0], [0], [1], [0, 0, 1, 1], [], []>} : vector<2x64xf32>, vector<64x32xf32>, vector<2x32xf32> -> vector<2x32xf32>
    %47 = arith.addf %39, %46 : vector<2x32xf32>
    %48 = vector.extract_strided_slice %14 {offsets = [4, 0], sizes = [1, 128], strides = [1, 1]} : vector<8x128xf32> to vector<1x128xf32>
    %49 = vector.extract_strided_slice %48 {offsets = [0, 0], sizes = [1, 64], strides = [1, 1]} : vector<1x128xf32> to vector<1x64xf32>
    %50 = vector.extract_strided_slice %48 {offsets = [0, 64], sizes = [1, 64], strides = [1, 1]} : vector<1x128xf32> to vector<1x64xf32>
    %51 = tpu.concatenate %49, %50 in 0 : vector<1x64xf32>, vector<1x64xf32> -> vector<2x64xf32>
    %c4 = arith.constant 4 : index
    %c0_20 = arith.constant 0 : index
    %c0_21 = arith.constant 0 : index
    %52 = vector.load %arg3[%c4, %c0_20, %c0_21] : memref<8x64x32xf32, #tpu.memory_space<vmem>>, vector<1x64x32xf32>
    %53 = vector.shape_cast %52 : vector<1x64x32xf32> to vector<64x32xf32>
    %cst_22 = arith.constant dense<0.000000e+00> : vector<2x32xf32>
    %54 = tpu.matmul %51, %53, %cst_22 {dimension_numbers = #tpu.dot_dimension_numbers<[1], [0], [0], [1], [0, 0, 1, 1], [], []>} : vector<2x64xf32>, vector<64x32xf32>, vector<2x32xf32> -> vector<2x32xf32>
    %55 = arith.addf %47, %54 : vector<2x32xf32>
    %56 = vector.extract_strided_slice %14 {offsets = [5, 0], sizes = [1, 128], strides = [1, 1]} : vector<8x128xf32> to vector<1x128xf32>
    %57 = vector.extract_strided_slice %56 {offsets = [0, 0], sizes = [1, 64], strides = [1, 1]} : vector<1x128xf32> to vector<1x64xf32>
    %58 = vector.extract_strided_slice %56 {offsets = [0, 64], sizes = [1, 64], strides = [1, 1]} : vector<1x128xf32> to vector<1x64xf32>
    %59 = tpu.concatenate %57, %58 in 0 : vector<1x64xf32>, vector<1x64xf32> -> vector<2x64xf32>
    %c5 = arith.constant 5 : index
    %c0_23 = arith.constant 0 : index
    %c0_24 = arith.constant 0 : index
    %60 = vector.load %arg3[%c5, %c0_23, %c0_24] : memref<8x64x32xf32, #tpu.memory_space<vmem>>, vector<1x64x32xf32>
    %61 = vector.shape_cast %60 : vector<1x64x32xf32> to vector<64x32xf32>
    %cst_25 = arith.constant dense<0.000000e+00> : vector<2x32xf32>
    %62 = tpu.matmul %59, %61, %cst_25 {dimension_numbers = #tpu.dot_dimension_numbers<[1], [0], [0], [1], [0, 0, 1, 1], [], []>} : vector<2x64xf32>, vector<64x32xf32>, vector<2x32xf32> -> vector<2x32xf32>
    %63 = arith.addf %55, %62 : vector<2x32xf32>
    %64 = vector.extract_strided_slice %14 {offsets = [6, 0], sizes = [1, 128], strides = [1, 1]} : vector<8x128xf32> to vector<1x128xf32>
    %65 = vector.extract_strided_slice %64 {offsets = [0, 0], sizes = [1, 64], strides = [1, 1]} : vector<1x128xf32> to vector<1x64xf32>
    %66 = vector.extract_strided_slice %64 {offsets = [0, 64], sizes = [1, 64], strides = [1, 1]} : vector<1x128xf32> to vector<1x64xf32>
    %67 = tpu.concatenate %65, %66 in 0 : vector<1x64xf32>, vector<1x64xf32> -> vector<2x64xf32>
    %c6 = arith.constant 6 : index
    %c0_26 = arith.constant 0 : index
    %c0_27 = arith.constant 0 : index
    %68 = vector.load %arg3[%c6, %c0_26, %c0_27] : memref<8x64x32xf32, #tpu.memory_space<vmem>>, vector<1x64x32xf32>
    %69 = vector.shape_cast %68 : vector<1x64x32xf32> to vector<64x32xf32>
    %cst_28 = arith.constant dense<0.000000e+00> : vector<2x32xf32>
    %70 = tpu.matmul %67, %69, %cst_28 {dimension_numbers = #tpu.dot_dimension_numbers<[1], [0], [0], [1], [0, 0, 1, 1], [], []>} : vector<2x64xf32>, vector<64x32xf32>, vector<2x32xf32> -> vector<2x32xf32>
    %71 = arith.addf %63, %70 : vector<2x32xf32>
    %72 = vector.extract_strided_slice %14 {offsets = [7, 0], sizes = [1, 128], strides = [1, 1]} : vector<8x128xf32> to vector<1x128xf32>
    %73 = vector.extract_strided_slice %72 {offsets = [0, 0], sizes = [1, 64], strides = [1, 1]} : vector<1x128xf32> to vector<1x64xf32>
    %74 = vector.extract_strided_slice %72 {offsets = [0, 64], sizes = [1, 64], strides = [1, 1]} : vector<1x128xf32> to vector<1x64xf32>
    %75 = tpu.concatenate %73, %74 in 0 : vector<1x64xf32>, vector<1x64xf32> -> vector<2x64xf32>
    %c7 = arith.constant 7 : index
    %c0_29 = arith.constant 0 : index
    %c0_30 = arith.constant 0 : index
    %76 = vector.load %arg3[%c7, %c0_29, %c0_30] : memref<8x64x32xf32, #tpu.memory_space<vmem>>, vector<1x64x32xf32>
    %77 = vector.shape_cast %76 : vector<1x64x32xf32> to vector<64x32xf32>
    %cst_31 = arith.constant dense<0.000000e+00> : vector<2x32xf32>
    %78 = tpu.matmul %75, %77, %cst_31 {dimension_numbers = #tpu.dot_dimension_numbers<[1], [0], [0], [1], [0, 0, 1, 1], [], []>} : vector<2x64xf32>, vector<64x32xf32>, vector<2x32xf32> -> vector<2x32xf32>
    %79 = arith.addf %71, %78 : vector<2x32xf32>
    %c0_32 = arith.constant 0 : index
    %c0_33 = arith.constant 0 : index
    %80 = vector.load %arg4[%c0_32, %c0_33] : memref<1x32xf32, #tpu.memory_space<vmem>>, vector<1x32xf32>
    %81 = vector.broadcast %80 : vector<1x32xf32> to vector<2x32xf32>
    %82 = arith.addf %79, %81 : vector<2x32xf32>
    %c0_34 = arith.constant 0 : index
    %c0_35 = arith.constant 0 : index
    %83 = vector.load %arg5[%c0_34, %c0_35] : memref<32x10xf32, #tpu.memory_space<vmem>>, vector<32x10xf32>
    %cst_36 = arith.constant dense<0.000000e+00> : vector<2x10xf32>
    %84 = tpu.matmul %82, %83, %cst_36 {dimension_numbers = #tpu.dot_dimension_numbers<[1], [0], [0], [1], [0, 0, 1, 1], [], []>} : vector<2x32xf32>, vector<32x10xf32>, vector<2x10xf32> -> vector<2x10xf32>
    %c0_37 = arith.constant 0 : index
    %c0_38 = arith.constant 0 : index
    %85 = vector.load %arg6[%c0_37, %c0_38] : memref<1x10xf32, #tpu.memory_space<vmem>>, vector<1x10xf32>
    %86 = vector.broadcast %85 : vector<1x10xf32> to vector<2x10xf32>
    %87 = arith.addf %84, %86 : vector<2x10xf32>
    %c0_39 = arith.constant 0 : index
    %c0_40 = arith.constant 0 : index
    %88 = vector.load %arg7[%c0_39, %c0_40] : memref<2x10xf32, #tpu.memory_space<vmem>>, vector<2x10xf32>
    tpu.vector_store %arg7[%c0_39, %c0_40], %87 {strides = array<i32>} : memref<2x10xf32, #tpu.memory_space<vmem>>, vector<2x10xf32>,
    return
  }
}

</mosaic_0001>

<bundles_post_ra>
// kernel: trunk_embedder_classifier.1
= control target key start
LH: loop header
LB: loop body
LE: loop exit
PB: predicated region body
PF: predicated region fallthrough
CT: control target
= control target key end

     0   :  { %v1499_v7 = vmov 0.0   ;;  %v1500_v13 = vmov 0   ;;  %vm52_vm0 = vcmask 1043456   ;;  %s1942_s0 = inlined_call_operand.vmem [shape: f32[36,512], index: 0, kind: input, shape index: {}]   ;;  %s1943_s1 = inlined_call_operand.vmem [shape: f32[8,36], index: 1, kind: input, shape index: {}]   ;;  %s1944_s2 = inlined_call_operand.vmem [shape: f32[8,1], index: 2, kind: input, shape index: {}]   ;;  %s1945_s3 = inlined_call_operand.vmem [shape: f32[8,64,32], index: 3, kind: input, shape index: {}]   ;;  %s1946_s4 = inlined_call_operand.vmem [shape: f32[1,32], index: 4, kind: input, shape index: {}]   ;;  %s1947_s5 = inlined_call_operand.vmem [shape: f32[32,10], index: 5, kind: input, shape index: {}]   ;;  %s1948_s6 = inlined_call_operand.vmem [shape: f32[1,10], index: 6, kind: input, shape index: {}]   ;;  %s1949_s7 = inlined_call_operand.hbm [shape: f32[2,10], index: 7, kind: output, shape index: {}]  }
   0x1   :  { %v29_v0 = vld [vmem:[%s1942_s0 + $0x8] sm:$0xff]  ;;  %v28_v2 = vld [vmem:[%s1942_s0] sm:$0xff]  ;;  %v31_v5 = vld [vmem:[%s1942_s0 + $0x18] sm:$0xff]  ;;  %129 = vmatprep.mubr.f32.mxu0 %v1499_v7  ;;  %200 = vmatprep.mubr.f32.mxu1 %v1499_v7 }
   0x2   :  { %v33_v1 = vld [vmem:[%s1942_s0 + $0x28] sm:$0xff]  ;;  %v32_v4 = vld [vmem:[%s1942_s0 + $0x20] sm:$0xff]  ;;  %v35_v6 = vld [vmem:[%s1942_s0 + $0x38] sm:$0xff]  ;;  %1474 = vset.pattern.permute.xlu0 %v1500_v13 }
   0x3   :  { %v1350_v3 = vpack.c.bf16 %v33_v1, %v29_v0  ;;  %v1352_v8 = vpack.c.bf16 %v32_v4, %v28_v2  ;;  %v1358_v9 = vpack.c.bf16 %v35_v6, %v31_v5  ;;  %v30_v10 = vld [vmem:[%s1942_s0 + $0x10] sm:$0xff]  ;;  %v37_v12 = vld [vmem:[%s1942_s0 + $0x48] sm:$0xff]  ;;  %v36_v16 = vld [vmem:[%s1942_s0 + $0x40] sm:$0xff] }
   0x4   :  { %v34_v11 = vld [vmem:[%s1942_s0 + $0x30] sm:$0xff]  ;;  %v41_v15 = vld [vmem:[%s1942_s0 + $0x68] sm:$0xff]  ;;  %v40_v17 = vld [vmem:[%s1942_s0 + $0x60] sm:$0xff] }
   0x5   :  { %1351 = vmatprep.subr.bf16.mxu0 %v1350_v3  ;;  %v1360_v14 = vpack.c.bf16 %v34_v11, %v30_v10  ;;  %1359 = vmatprep.subr.bf16.mxu1 %v1358_v9  ;;  %v1354_v18 = vpack.c.bf16 %v41_v15, %v37_v12  ;;  %v1356_v19 = vpack.c.bf16 %v40_v17, %v36_v16  ;;  %v39_v20 = vld [vmem:[%s1942_s0 + $0x58] sm:$0xff]  ;;  %v38_v22 = vld [vmem:[%s1942_s0 + $0x50] sm:$0xff]  ;;  %v45_v26 = vld [vmem:[%s1942_s0 + $0x88] sm:$0xf] }
   0x6   :  { %1353 = vmatpush1.bf16.msra.mxu0 %v1352_v8  ;;  %v43_v21 = vld [vmem:[%s1942_s0 + $0x78] sm:$0xff]  ;;  %v42_v24 = vld [vmem:[%s1942_s0 + $0x70] sm:$0xff]  ;;  %v210_v28 = vld [vmem:[%s1944_s2] sm:$0xff] }
   0x7   :  { %1361 = vmatpush1.bf16.msra.mxu1 %v1360_v14  ;;  %v1362_v23 = vpack.c.bf16 %v43_v21, %v39_v20  ;;  %1355 = vmatprep.subr.bf16.mxu0 %v1354_v18  ;;  %v1364_v25 = vpack.c.bf16 %v42_v24, %v38_v22  ;;  %v47_v27 = vld [vmem:[%s1942_s0 + $0x98] sm:$0xf] }
   0x9   :  { %1363 = vmatprep.subr.bf16.mxu1 %v1362_v23 }
   0xa   :  { %12 = vsyncpa [#allocation3], 0  ;;  %1357 = vmatpush1.bf16.msra.mxu0 %v1356_v19  ;;  %213 = vperm.xlu0 %1474, %v210_v28   ;;  %v44_v29 = vld [vmem:[%s1942_s0 + $0x80] sm:$0xf]  ;;  %vm48_vm1 = vcmask 293888   ;;  %v1044_v33 = vld [vmem:[%s1945_s3 + $0x48] sm:$0xff] }
   0xb   :  { %1365 = vmatpush1.bf16.msra.mxu1 %v1364_v25  ;;  %1037 = vmatprep.subr.msk.mxu0 %vm52_vm0, %v45_v26  ;;  %v27_v30 = vld [vmem:[%s1943_s1] sm:$0xff]  ;;  %v46_v31 = vld [vmem:[%s1942_s0 + $0x90] sm:$0xf]  ;;  %v1501_v35 = vmov 0.0|0.0   ;;  %v226_v37 = vld [vmem:[%s1945_s3 + $0x8] sm:$0xff]  ;;  %vm1502_vm2 = vmmov 0  }
   0xc   :  { %1040 = vmatprep.subr.msk.mxu1 %vm52_vm0, %v47_v27  ;;  %v1043_v32 = vld [vmem:[%s1945_s3 + $0x40] sm:$0xff]  ;;  %v1045_v38 = vld [vmem:[%s1945_s3 + $0x50] sm:$0xff]  ;;  %v1046_v39 = vld [vmem:[%s1945_s3 + $0x58] sm:$0xff]  ;;  %s1503_s0 = smov 64   ;;  %vm223_vm3 = vcmask 1040384   ;;  %vm248_vm4 = vcmask 523264  }
   0xd   :  { %v225_v34 = vld [vmem:[%s1945_s3] sm:$0xff]  ;;  %v1367_v36 = vpack.c.bf16 %v1044_v33, %v1043_v32  ;;  %v227_v41 = vld [vmem:[%s1945_s3 + $0x10] sm:$0xff]  ;;  %v228_v42 = vld [vmem:[%s1945_s3 + $0x18] sm:$0xff]  ;;  %v1370_v43 = vpack.c.bf16 %v1046_v39, %v1045_v38  ;;  %vm947_vm5 = vcmask 261120   ;;  %s1504_s28 = smov [#allocation2]   ;;  %vm1021_vm6 = vcmask 74752  }
   0xe   :  { %1038 = vmatpush1.msk.msra.mxu0 %vm52_vm0, %v44_v29  ;;  %v1379_v40 = vpack.c.bf16 %v226_v37, %v225_v34  ;;  %v1382_v44 = vpack.c.bf16 %v228_v42, %v227_v41  ;;  %v1047_v45 = vld [vmem:[%s1945_s3 + $0x60] sm:$0xff]  ;;  %v1048_v46 = vld [vmem:[%s1945_s3 + $0x68] sm:$0xff]  ;;  %v1049_v51 = vld [vmem:[%s1945_s3 + $0x70] sm:$0xff]  ;;  %s1029_s29 = sshll.u32 %s1504_s28, 4  ;;  %s1030_s29 = int_to_ptr.vmem [resolvable:$true] %s1029_s29 }
   0xf   :  { %1039 = vmatmul.mubr.msk.f32.vlgmr.msra.gmra.mrb[0].mxu0 %vm48_vm1, %v27_v30  ;;  %1041 = vmatpush1.msk.msra.mxu1 %vm52_vm0, %v46_v31  ;;  %v229_v47 = vld [vmem:[%s1945_s3 + $0x20] sm:$0xff]  ;;  %v230_v48 = vld [vmem:[%s1945_s3 + $0x28] sm:$0xff]  ;;  %v1373_v49 = vpack.c.bf16 %v1048_v46, %v1047_v45  ;;  %v1050_v52 = vld [vmem:[%s1945_s3 + $0x78] sm:$0xff]  ;;  %s1475_s30 = scalar_lea.vmem %s1030_s29, 32  ;;  %p1480_p1 = scmp.lt.s32.totalorder %s1030_s29, %s1030_s29 }
  0x10   :  { %1042 = vmatmul.mubr.msk.f32.vlgmr.msra.gmra.mrb[0].mxu1 %vm48_vm1, %v27_v30  ;;  %1366 = vmatprep.subr.bf16.mxu0 %v1501_v35  ;;  %v1385_v50 = vpack.c.bf16 %v230_v48, %v229_v47  ;;  %v231_v53 = vld [vmem:[%s1945_s3 + $0x30] sm:$0xff]  ;;  %v232_v54 = vld [vmem:[%s1945_s3 + $0x38] sm:$0xff]  ;;  %v1376_v55 = vpack.c.bf16 %v1050_v52, %v1049_v51  ;;  %v1053_v11 = vld [vmem:[%s1945_s3 + $0x80] sm:$0xff]  ;;  %p1476_p0 = scmp.ne.s32.totalorder %s1030_s29, %s1475_s30  ;;  %p1481_p2 = scmp.lt.s32.totalorder %s1475_s30, %s1475_s30 }
  0x11   :  { %1378 = vmatprep.subr.bf16.mxu1 %v1501_v35  ;;  %1368 = vmatpush3.bf16.msra.mxu0 %v1367_v36  ;;  %v1388_v56 = vpack.c.bf16 %v232_v54, %v231_v53  ;;  %v1054_v12 = vld [vmem:[%s1945_s3 + $0x88] sm:$0xff]  ;;  %v1062_v13 = vld [vmem:[%s1945_s3 + $0xc0] sm:$0xff]  ;;  %v1055_v17 = vld [vmem:[%s1945_s3 + $0x90] sm:$0xff] }
  0x12   :  { %1380 = vmatpush3.bf16.msra.mxu1 %v1379_v40  ;;  %1369 = vmatprep.subr.bf16.mxu0 %v1501_v35  ;;  %v1063_v14 = vld [vmem:[%s1945_s3 + $0xc8] sm:$0xff]  ;;  %v1391_v15 = vpack.c.bf16 %v1054_v12, %v1053_v11  ;;  %v1056_v18 = vld [vmem:[%s1945_s3 + $0x98] sm:$0xff]  ;;  %v1064_v22 = vld [vmem:[%s1945_s3 + $0xd0] sm:$0xff]  ;;  %p1482_p3 = por %p1481_p2, %p1480_p1 }
  0x13   :  { %1381 = vmatprep.subr.bf16.mxu1 %v1501_v35  ;;  %1203 = vmatprep.mubr.msk.f32.mxu0 %vm1502_vm2, %v1499_v7  ;;  %v1403_v20 = vpack.c.bf16 %v1063_v14, %v1062_v13  ;;  %v1065_v23 = vld [vmem:[%s1945_s3 + $0xd8] sm:$0xff]  ;;  %v1394_v25 = vpack.c.bf16 %v1056_v18, %v1055_v17  ;;  %v1057_v26 = vld [vmem:[%s1945_s3 + $0xa0] sm:$0xff]  ;;  %v1058_v27 = vld [vmem:[%s1945_s3 + $0xa8] sm:$0xff] }
  0x14   :  { %1222 = vmatprep.mubr.msk.f32.mxu1 %vm1502_vm2, %v1499_v7  ;;  %v1406_v28 = vpack.c.bf16 %v1065_v23, %v1064_v22  ;;  %v1066_v29 = vld [vmem:[%s1945_s3 + $0xe0] sm:$0xff]  ;;  %v1067_v30 = vld [vmem:[%s1945_s3 + $0xe8] sm:$0xff]  ;;  %v1397_v31 = vpack.c.bf16 %v1058_v27, %v1057_v26  ;;  %v1059_v32 = vld [vmem:[%s1945_s3 + $0xb0] sm:$0xff]  ;;  %p1483_p4 = pnand %p1482_p3, %p1476_p0 }
  0x15   :  { %1371 = vmatpush3.bf16.msra.mxu0 %v1370_v43  ;;  %v1060_v33 = vld [vmem:[%s1945_s3 + $0xb8] sm:$0xff]  ;;  %v1409_v34 = vpack.c.bf16 %v1067_v30, %v1066_v29  ;;  %v1068_v36 = vld [vmem:[%s1945_s3 + $0xf0] sm:$0xff]  ;;  %v1071_v39 = vld [vmem:[%s1945_s3 + $0x100] sm:$0xff] }
  0x16   :  { %1383 = vmatpush3.bf16.msra.mxu1 %v1382_v44  ;;  %1372 = vmatprep.subr.bf16.mxu0 %v1501_v35  ;;  %v1069_v37 = vld [vmem:[%s1945_s3 + $0xf8] sm:$0xff]  ;;  %v1400_v38 = vpack.c.bf16 %v1060_v33, %v1059_v32  ;;  %v1072_v40 = vld [vmem:[%s1945_s3 + $0x108] sm:$0xff]  ;;  %v1080_v43 = vld [vmem:[%s1945_s3 + $0x140] sm:$0xff] }
  0x17   :  { %1384 = vmatprep.subr.bf16.mxu1 %v1501_v35  ;;  %v1412_v41 = vpack.c.bf16 %v1069_v37, %v1068_v36  ;;  %v1081_v44 = vld [vmem:[%s1945_s3 + $0x148] sm:$0xff]  ;;  %v1415_v45 = vpack.c.bf16 %v1072_v40, %v1071_v39  ;;  %v1073_v47 = vld [vmem:[%s1945_s3 + $0x110] sm:$0xff]  ;;  %v1074_v48 = vld [vmem:[%s1945_s3 + $0x118] sm:$0xff] }
  0x18   :  { %v1082_v51 = vld [vmem:[%s1945_s3 + $0x150] sm:$0xff]  ;;  %v1083_v52 = vld [vmem:[%s1945_s3 + $0x158] sm:$0xff]  ;;  %v1418_v54 = vpack.c.bf16 %v1074_v48, %v1073_v47  ;;  %v1098_v13 = vld [vmem:[%s1945_s3 + $0x1c0] sm:$0xff] }
  0x19   :  { %1374 = vmatpush3.bf16.msra.mxu0 %v1373_v49  ;;  %v1099_v14 = vld [vmem:[%s1945_s3 + $0x1c8] sm:$0xff]  ;;  %v1091_v17 = vld [vmem:[%s1945_s3 + $0x190] sm:$0xff]  ;;  %v1092_v18 = vld [vmem:[%s1945_s3 + $0x198] sm:$0xff] }
  0x1a   :  { %1386 = vmatpush3.bf16.msra.mxu1 %v1385_v50  ;;  %1375 = vmatprep.subr.bf16.mxu0 %v1501_v35  ;;  %v1427_v50 = vpack.c.bf16 %v1081_v44, %v1080_v43  ;;  %v1101_v22 = vld [vmem:[%s1945_s3 + $0x1d8] sm:$0xff]  ;;  %v1103_v27 = vld [vmem:[%s1945_s3 + $0x1e8] sm:$0xff]  ;;  %v1095_v29 = vld [vmem:[%s1945_s3 + $0x1b0] sm:$0xff] }
  0x1b   :  { %1387 = vmatprep.subr.bf16.mxu1 %v1501_v35  ;;  %v1096_v30 = vld [vmem:[%s1945_s3 + $0x1b8] sm:$0xff]  ;;  %v1104_v32 = vld [vmem:[%s1945_s3 + $0x1f0] sm:$0xff] }
  0x1c   :  { %v1105_v33 = vld [vmem:[%s1945_s3 + $0x1f8] sm:$0xff] }
  0x1d   :  { %1377 = vmatpush3.bf16.msra.mxu0 %v1376_v55  ;;  %v1075_v55 = vld [vmem:[%s1945_s3 + $0x120] sm:$0xff]  ;;  %v1460_v36 = vpack.c.bf16 %v1105_v33, %v1104_v32 }
  0x1e   :  { %1389 = vmatpush3.bf16.msra.mxu1 %v1388_v56  ;;  %1390 = vmatprep.subr.bf16.mxu0 %v1501_v35  ;;  %v1076_v56 = vld [vmem:[%s1945_s3 + $0x128] sm:$0xff] }
  0x1f   :  { %1402 = vmatprep.subr.bf16.mxu1 %v1501_v35 }
  0x89   :  { %v214_v63 = vpop.permute.xlu0 %213 }
  0xe2   :  { %v131_v57 = vpop.f32.mrb[0].mxu0 }
  0xe3   :  { %v133_v58 = vpop.f32.mrb[1].mxu0  ;;  %v202_v59 = vpop.f32.mrb[0].mxu1 }
  0xe4   :  { %v207_v60 = vmax.f32 %v131_v57, %v133_v58  ;;  %v204_v61 = vpop.f32.mrb[1].mxu1  ;;  %v1430_v57 = vpack.c.bf16 %v1083_v52, %v1082_v51  ;;  %v1084_v58 = vld [vmem:[%s1945_s3 + $0x160] sm:$0xff] }
  0xe6   :  { %v208_v62 = vmax.f32 %v207_v60, %v202_v59  ;;  %v1085_v59 = vld [vmem:[%s1945_s3 + $0x168] sm:$0xff]  ;;  %v1421_v60 = vpack.c.bf16 %v1076_v56, %v1075_v55 }
  0xe8   :  { %v209_v0 = vmax.f32 %v208_v62, %v204_v61  ;;  %v1077_v61 = vld [vmem:[%s1945_s3 + $0x130] sm:$0xff]  ;;  %v1078_v62 = vld [vmem:[%s1945_s3 + $0x138] sm:$0xff] }
  0xea   :  { %v216_v1 = vadd.f32 %v214_v63, %v209_v0  ;;  %v1433_v63 = vpack.c.bf16 %v1085_v59, %v1084_v58  ;;  %v1086_v0 = vld [vmem:[%s1945_s3 + $0x170] sm:$0xff] }
  0xec   :  { %v1679_v2 = vmax.f32 %v216_v1, 0.0  ;;  %v1087_v1 = vld [vmem:[%s1945_s3 + $0x178] sm:$0xff] }
  0xed   :  { %v1436_v11 = vpack.c.bf16 %v1087_v1, %v1086_v0 }
  0xee   :  { %235 = vrot.lane.b32.xlu0 %v1679_v2, %s1503_s0  ;;  %v219_v3 = vrot.slane %v1679_v2, 7  ;;  %v395_v4 = vrot.slane %v1679_v2, 2  ;;  %v233_v5 = vrot.slane %v1679_v2, 1  ;;  %v573_v6 = vrot.slane %v1679_v2, 4 }
  0xef   :  { %v484_v8 = vrot.slane %v1679_v2, 3  ;;  %v751_v9 = vrot.slane %v1679_v2, 6  ;;  %v662_v10 = vrot.slane %v1679_v2, 5 }
  0xf0   :  { %220 = vrot.lane.b32.xlu1 %v219_v3, %s1503_s0 }
  0xf2   :  { %486 = vrot.lane.b32.xlu0 %v395_v4, %s1503_s0 }
  0xf4   :  { %397 = vrot.lane.b32.xlu1 %v233_v5, %s1503_s0 }
  0xf6   :  { %664 = vrot.lane.b32.xlu0 %v573_v6, %s1503_s0 }
  0xf8   :  { %575 = vrot.lane.b32.xlu1 %v484_v8, %s1503_s0 }
  0xfa   :  { %841 = vrot.lane.b32.xlu0 %v751_v9, %s1503_s0 }
  0xfc   :  { %753 = vrot.lane.b32.xlu1 %v662_v10, %s1503_s0 }
 0x160   :  { %v236_v16 = vpop.permute.xlu0 %235 }
 0x161   :  { %v238_v19 = vsel %vm223_vm3, %v233_v5, %v236_v16  ;;  %v1089_v5 = vld [vmem:[%s1945_s3 + $0x180] sm:$0xff] }
 0x162   :  { %1204 = vmatmul.mubr.msk.f32.vlgmr.msra.gmra.mrb[2].mxu0 %vm248_vm4, %v238_v19  ;;  %v221_v21 = vpop.permute.xlu1 %220 }
 0x163   :  { %1392 = vmatpush3.bf16.msra.mxu0 %v1391_v15  ;;  %v224_v24 = vsel %vm223_vm3, %v1679_v2, %v221_v21  ;;  %1241 = vmatprep.mubr.msk.f32.mxu0 %vm1502_vm2, %v1499_v7  ;;  %v1100_v21 = vld [vmem:[%s1945_s3 + $0x1d0] sm:$0xff] }
 0x164   :  { %1223 = vmatmul.mubr.msk.f32.vlgmr.msra.gmra.mrb[2].mxu1 %vm248_vm4, %v224_v24  ;;  %1393 = vmatprep.subr.bf16.mxu0 %v1501_v35  ;;  %v487_v46 = vpop.permute.xlu0 %486  ;;  %v1093_v24 = vld [vmem:[%s1945_s3 + $0x1a0] sm:$0xff]  ;;  %v1454_v26 = vpack.c.bf16 %v1101_v22, %v1100_v21  ;;  %v938_v2 = vld [vmem:[%s1947_s5 + $0x10] sm:$0xff] }
 0x165   :  { %1404 = vmatpush3.bf16.msra.mxu1 %v1403_v20  ;;  %1260 = vmatprep.mubr.msk.f32.mxu1 %vm1502_vm2, %v1499_v7  ;;  %v489_v53 = vsel %vm223_vm3, %v484_v8, %v487_v46  ;;  %v1090_v8 = vld [vmem:[%s1945_s3 + $0x188] sm:$0xff]  ;;  %v1451_v20 = vpack.c.bf16 %v1099_v14, %v1098_v13 }
 0x166   :  { %1405 = vmatprep.subr.bf16.mxu1 %v1501_v35  ;;  %v398_v42 = vpop.permute.xlu1 %397  ;;  %v1439_v15 = vpack.c.bf16 %v1090_v8, %v1089_v5  ;;  %v1108_v5 = vld [vmem:[%s1948_s6] ss:$0 sm:$0xff] }
 0x167   :  { %1395 = vmatpush3.bf16.msra.mxu0 %v1394_v25  ;;  %v400_v49 = vsel %vm223_vm3, %v395_v4, %v398_v42  ;;  %v1424_v4 = vpack.c.bf16 %v1078_v62, %v1077_v61  ;;  %v1094_v25 = vld [vmem:[%s1945_s3 + $0x1a8] sm:$0xff] }
 0x168   :  { %1396 = vmatprep.subr.bf16.mxu0 %v1501_v35  ;;  %v665_v16 = vpop.permute.xlu0 %664 }
 0x169   :  { %1407 = vmatpush3.bf16.msra.mxu1 %v1406_v28  ;;  %v667_v23 = vsel %vm223_vm3, %v662_v10, %v665_v16  ;;  %v1102_v10 = vld [vmem:[%s1945_s3 + $0x1e0] sm:$0xff]  ;;  %v1445_v28 = vpack.c.bf16 %v1094_v25, %v1093_v24 }
 0x16a   :  { %1408 = vmatprep.subr.bf16.mxu1 %v1501_v35  ;;  %v576_v12 = vpop.permute.xlu1 %575 }
 0x16b   :  { %1398 = vmatpush3.bf16.msra.mxu0 %v1397_v31  ;;  %v578_v19 = vsel %vm223_vm3, %v573_v6, %v576_v12  ;;  %v1442_v6 = vpack.c.bf16 %v1092_v18, %v1091_v17  ;;  %v1457_v31 = vpack.c.bf16 %v1103_v27, %v1102_v10 }
 0x16c   :  { %1399 = vmatprep.subr.bf16.mxu0 %v1501_v35 }
 0x16d   :  { %1410 = vmatpush3.bf16.msra.mxu1 %v1409_v34  ;;  %v1448_v34 = vpack.c.bf16 %v1096_v30, %v1095_v29 }
 0x16e   :  { %1411 = vmatprep.subr.bf16.mxu1 %v1501_v35  ;;  %v754_v37 = vpop.permute.xlu1 %753 }
 0x16f   :  { %1401 = vmatpush3.bf16.msra.mxu0 %v1400_v38  ;;  %v842_v38 = vpop.permute.xlu0 %841  ;;  %v756_v39 = vsel %vm223_vm3, %v751_v9, %v754_v37  ;;  %v937_v9 = vld [vmem:[%s1947_s5 + $0x8] sm:$0xff] }
 0x170   :  { %1414 = vmatprep.subr.bf16.mxu0 %v1501_v35  ;;  %v844_v40 = vsel %vm223_vm3, %v219_v3, %v842_v38 }
 0x171   :  { %1413 = vmatpush3.bf16.msra.mxu1 %v1412_v41  ;;  %v936_v41 = vld [vmem:[%s1947_s5] sm:$0xff] }
 0x172   :  { %1242 = vmatmul.mubr.msk.f32.vlgmr.msra.gmra.mrb[4].mxu0 %vm248_vm4, %v400_v49  ;;  %1426 = vmatprep.subr.bf16.mxu1 %v1501_v35  ;;  %v1463_v42 = vpack.c.bf16 %v937_v9, %v936_v41 }
 0x173   :  { %1416 = vmatpush3.bf16.msra.mxu0 %v1415_v45  ;;  %1279 = vmatprep.mubr.msk.f32.mxu0 %vm1502_vm2, %v1499_v7 }
 0x174   :  { %1261 = vmatmul.mubr.msk.f32.vlgmr.msra.gmra.mrb[4].mxu1 %vm248_vm4, %v489_v53  ;;  %1417 = vmatprep.subr.bf16.mxu0 %v1501_v35 }
 0x175   :  { %1428 = vmatpush3.bf16.msra.mxu1 %v1427_v50  ;;  %1298 = vmatprep.mubr.msk.f32.mxu1 %vm1502_vm2, %v1499_v7 }
 0x176   :  { %1429 = vmatprep.subr.bf16.mxu1 %v1501_v35 }
 0x177   :  { %1419 = vmatpush3.bf16.msra.mxu0 %v1418_v54 }
 0x178   :  { %1420 = vmatprep.subr.bf16.mxu0 %v1501_v35 }
 0x179   :  { %1431 = vmatpush3.bf16.msra.mxu1 %v1430_v57 }
 0x17a   :  { %1432 = vmatprep.subr.bf16.mxu1 %v1501_v35 }
 0x17b   :  { %1422 = vmatpush3.bf16.msra.mxu0 %v1421_v60 }
 0x17c   :  { %1423 = vmatprep.subr.bf16.mxu0 %v1501_v35 }
 0x17d   :  { %1434 = vmatpush3.bf16.msra.mxu1 %v1433_v63  ;;  %v1107_v63 = vld [vmem:[%s1946_s4] ss:$0 sm:$0xff] }
 0x17e   :  { %1435 = vmatprep.subr.bf16.mxu1 %v1501_v35 }
 0x17f   :  { %1425 = vmatpush3.bf16.msra.mxu0 %v1424_v4 }
 0x180   :  { %1438 = vmatprep.subr.bf16.mxu0 %v1501_v35 }
 0x181   :  { %1437 = vmatpush3.bf16.msra.mxu1 %v1436_v11 }
 0x182   :  { %1280 = vmatmul.mubr.msk.f32.vlgmr.msra.gmra.mrb[6].mxu0 %vm248_vm4, %v578_v19  ;;  %1450 = vmatprep.subr.bf16.mxu1 %v1501_v35 }
 0x183   :  { %1440 = vmatpush3.bf16.msra.mxu0 %v1439_v15  ;;  %1317 = vmatprep.mubr.msk.f32.mxu0 %vm1502_vm2, %v1499_v7 }
 0x184   :  { %1299 = vmatmul.mubr.msk.f32.vlgmr.msra.gmra.mrb[6].mxu1 %vm248_vm4, %v667_v23  ;;  %1441 = vmatprep.subr.bf16.mxu0 %v1501_v35 }
 0x185   :  { %1452 = vmatpush3.bf16.msra.mxu1 %v1451_v20  ;;  %1336 = vmatprep.mubr.msk.f32.mxu1 %vm1502_vm2, %v1499_v7 }
 0x186   :  { %1453 = vmatprep.subr.bf16.mxu1 %v1501_v35 }
 0x187   :  { %1443 = vmatpush3.bf16.msra.mxu0 %v1442_v6 }
 0x188   :  { %1444 = vmatprep.subr.bf16.mxu0 %v1501_v35 }
 0x189   :  { %1455 = vmatpush3.bf16.msra.mxu1 %v1454_v26 }
 0x18a   :  { %1456 = vmatprep.subr.bf16.mxu1 %v1501_v35 }
 0x18b   :  { %1446 = vmatpush3.bf16.msra.mxu0 %v1445_v28 }
 0x18c   :  { %1447 = vmatprep.subr.bf16.mxu0 %v1501_v35 }
 0x18d   :  { %1458 = vmatpush3.bf16.msra.mxu1 %v1457_v31 }
 0x18e   :  { %1459 = vmatprep.subr.bf16.mxu1 %v1501_v35 }
 0x18f   :  { %1449 = vmatpush3.bf16.msra.mxu0 %v1448_v34 }
 0x190   :  { %1462 = vmatprep.subr.bf16.mxu0 %v1501_v35 }
 0x191   :  { %1461 = vmatpush3.bf16.msra.mxu1 %v1460_v36 }
 0x192   :  { %1318 = vmatmul.mubr.msk.f32.vlgmr.msra.gmra.mrb[8].mxu0 %vm248_vm4, %v756_v39 }
 0x193   :  { %1347 = vmatprep.mubr.msk.f32.mxu0 %vm1502_vm2, %v1499_v7  ;;  %1464 = vmatpush3.bf16.msra.mxu0 %v1463_v42  ;;  %v939_v7 = vld [vmem:[%s1947_s5 + $0x18] sm:$0xff] }
 0x194   :  { %1337 = vmatmul.mubr.msk.f32.vlgmr.msra.gmra.mrb[8].mxu1 %vm248_vm4, %v844_v40  ;;  %1465 = vmatprep.subr.bf16.mxu0 %v1501_v35  ;;  %v1466_v3 = vpack.c.bf16 %v939_v7, %v938_v2 }
 0x197   :  { %1467 = vmatpush3.bf16.msra.mxu0 %v1466_v3 }
 0x235   :  { %v318_v43 = vpop.f32.mrb[2].mxu0 }
 0x236   :  { %v1205_v44 = vpop.f32.mrb[3].mxu0 }
 0x237   :  { %v391_v45 = vpop.f32.mrb[2].mxu1 }
 0x238   :  { %v392_v46 = vadd.f32 %v391_v45, %v318_v43  ;;  %v1224_v47 = vpop.f32.mrb[3].mxu1 }
 0x245   :  { %v479_v48 = vpop.f32.mrb[4].mxu0 }
 0x246   :  { %v483_v49 = vadd.f32 %v479_v48, %v392_v46  ;;  %v1243_v50 = vpop.f32.mrb[5].mxu0 }
 0x247   :  { %v568_v51 = vpop.f32.mrb[4].mxu1 }
 0x248   :  { %v572_v35 = vadd.f32 %v568_v51, %v483_v49  ;;  %v1262_v52 = vpop.f32.mrb[5].mxu1 }
 0x255   :  { %v657_v53 = vpop.f32.mrb[6].mxu0 }
 0x256   :  { %v661_v54 = vadd.f32 %v657_v53, %v572_v35  ;;  %v1281_v55 = vpop.f32.mrb[7].mxu0 }
 0x257   :  { %v746_v56 = vpop.f32.mrb[6].mxu1 }
 0x258   :  { %v750_v57 = vadd.f32 %v746_v56, %v661_v54  ;;  %v1300_v58 = vpop.f32.mrb[7].mxu1 }
 0x265   :  { %v835_v59 = vpop.f32.mrb[8].mxu0 }
 0x266   :  { %v839_v60 = vadd.f32 %v835_v59, %v750_v57  ;;  %v1319_v61 = vpop.f32.mrb[9].mxu0 }
 0x267   :  { %v923_v62 = vpop.f32.mrb[8].mxu1 }
 0x268   :  { %v927_v0 = vadd.f32 %v923_v62, %v839_v60  ;;  %v1338_v1 = vpop.f32.mrb[9].mxu1 }
 0x26a   :  { %v935_v4 = vadd.f32 %v1107_v63, %v927_v0 }
 0x26c   :  { %1348 = vmatmul.mubr.msk.f32.vlgmr.msra.gmra.mrb[10].mxu0 %vm947_vm5, %v935_v4 }
 0x33f   :  { %v1017_v8 = vpop.f32.mrb[10].mxu0 }
 0x340   :  { %v1018_v11 = vadd.f32 %v1108_v5, %v1017_v8  ;;  %v1349_v12 = vpop.f32.mrb[11].mxu0 }
 0x342   :  { %1022 = vst.msk [vmem:[#allocation2] sm:$0x3] %vm1021_vm6, %v1018_v11 }
 0x343   :  { %1486 = shalt.err (!%p1483_p4)
}
 0x344   :  { %s1487_s9 = scalar_lea.hbm %s1949_s7, 32 }
 0x345   :  { %p1488_p5 = scmp.ne.s32.totalorder %s1949_s7, %s1487_s9  ;;  %p1491_p6 = scmp.lt.u32.totalorder %s1487_s9, %s1949_s7 }
 0x347   :  { %p1493_p7 = pnand %p1491_p6, %p1488_p5 }
 0x349   :  { %1496 = shalt.err (!%p1493_p7)
}
 0x34a   :  { %1032 = dma.vmem_to_hbm [thread:$0]  %s1030_s29, 32, %s1949_s7, [#allocation3]  }
 0x34b   :  { %1497 = dma.done.wait [#allocation3], 32  }
 0x34c   :  { %1498 = vsyncadd [#allocation3], 4294967264 }
 0x34d   :  { %1036 = vsyncpa [#allocation3], 1 }

</bundles_post_ra>
